<compile_context>
chip_gen: v6e
topology: v6e:2x2x1
jax: 0.10.0
libtpu: 0.0.40
codegen_flags: <defaults>
</compile_context>

<pallas_src>
import functools

import jax
import jax.numpy as jnp
from jax.experimental import pallas as pl
from jax.experimental.pallas import tpu as pltpu


_GN_EPS = 1e-5                       # torch.nn.GroupNorm default eps
_VMEM_WORKSET_BUDGET = 8 << 20       # 2*(in+out) double-buffered blocks budget


def _hardsigmoid(x):
    # torch.nn.Hardsigmoid: relu6(x + 3) / 6
    return jnp.minimum(jnp.maximum(x + 3.0, 0.0), 6.0) * (1.0 / 6.0)


def _round_up(v, m):
    return (v + m - 1) // m * m


def _divisors(n):
    return [d for d in range(1, n + 1) if n % d == 0]


# ---------------------------------------------------------------------------
# Core per-group computation (shared by both kernel variants).
# ---------------------------------------------------------------------------
def _scale_groups(xg, cam_wt, cam_b, gn_g, gn_b, sam_wt, sam_b):
    """xg: (N, cpg, W) float32 where each item is one ChannelSpilit group.

    Applies ChannelAttention to the first half of the channels and
    SpatialAttention to the second half; returns the scaled (N, cpg, W)
    tensor in the original (pre-shuffle) channel order."""
    n, cpg, w = xg.shape
    half = cpg // 2
    x1 = xg[:, :half, :]
    x2 = xg[:, half:, :]

    # --- ChannelAttention: mean over W -> Linear -> Hardsigmoid -> scale ---
    p1 = jnp.mean(x1, axis=2)                                    # (N, half)
    y1 = _hardsigmoid(
        jnp.dot(p1, cam_wt, preferred_element_type=jnp.float32) + cam_b)
    x1s = x1 * y1[:, :, None]

    # --- SpatialAttention: GroupNorm(num_groups == channels) == per-channel
    #     stats over W (one-pass E[x], E[x^2], f32), mean over channels,
    #     Linear(W,W), Hardsigmoid, scale the ORIGINAL x2. ---
    s1 = jnp.mean(x2, axis=2, keepdims=True)                     # (N, half, 1)
    s2 = jnp.mean(x2 * x2, axis=2, keepdims=True)
    var = jnp.maximum(s2 - s1 * s1, 0.0)
    xn = (x2 - s1) * jax.lax.rsqrt(var + _GN_EPS)
    xn = xn * gn_g[:, :, None] + gn_b[:, :, None]
    p2 = jnp.mean(xn, axis=1)                                    # (N, W)
    y2 = _hardsigmoid(
        jnp.dot(p2, sam_wt, preferred_element_type=jnp.float32) + sam_b)
    x2s = x2 * y2[:, None, :]

    return jnp.concatenate([x1s, x2s], axis=1)                   # (N, cpg, W)


# ---------------------------------------------------------------------------
# Kernel A (groups even): grid tiles (batch, group-pairs).  x is passed twice;
# xa holds pre-shuffle channels [base, base+nch), xb holds the shuffle-paired
# channels [base + C/2, base + C/2 + nch).  The lane concat of the two scaled
# blocks IS the shuffled output viewed as (B, C/2, 2W).
# ---------------------------------------------------------------------------
def _sablk_pair_kernel(xa_ref, xb_ref, cam_wt_ref, cam_b_ref, gn_g_ref,
                       gn_b_ref, sam_wt_ref, sam_b_ref, o_ref, *, cpg):
    tb, nch, w = xa_ref.shape
    ng = nch // cpg

    def scaled(ref):
        x = ref[...].astype(jnp.float32).reshape(tb * ng, cpg, w)
        y = _scale_groups(x, cam_wt_ref[...], cam_b_ref[...], gn_g_ref[...],
                          gn_b_ref[...], sam_wt_ref[...], sam_b_ref[...])
        return y.reshape(tb, nch, w)

    ya = scaled(xa_ref)
    yb = scaled(xb_ref)
    # ChannelShuffler(2) fused into a single lane-dense (128-lane) store.
    o_ref[...] = jnp.concatenate([ya, yb], axis=-1).astype(o_ref.dtype)


# ---------------------------------------------------------------------------
# Kernel B (fallback for odd `groups`): batch-tiled, full channel extent,
# still lane-dense output.
# ---------------------------------------------------------------------------
def _sablk_full_kernel(x_ref, cam_wt_ref, cam_b_ref, gn_g_ref, gn_b_ref,
                       sam_wt_ref, sam_b_ref, o_ref, *, cpg):
    tb, c, w = x_ref.shape
    g = c // cpg
    x = x_ref[...].astype(jnp.float32).reshape(tb * g, cpg, w)
    y = _scale_groups(x, cam_wt_ref[...], cam_b_ref[...], gn_g_ref[...],
                      gn_b_ref[...], sam_wt_ref[...], sam_b_ref[...])
    y = y.reshape(tb, c, w)
    hc = c // 2
    o_ref[...] = jnp.concatenate(
        [y[:, :hc, :], y[:, hc:, :]], axis=-1).astype(o_ref.dtype)


# ---------------------------------------------------------------------------
# Tiling heuristics (lane-padding + in/out double-buffering aware).
# ---------------------------------------------------------------------------
def _pick_tiling_pair(b, npairs, cpg, w, itemsize,
                      budget=_VMEM_WORKSET_BUDGET):
    lane_in = _round_up(w, 128)          # 64-lane input tile pads 2x in VMEM
    lane_out = _round_up(2 * w, 128)     # lane-dense output: no padding
    target_steps = min(4, b * npairs)    # >=4: both v7x TCs double-buffered
    best_key, best = None, (1, 1)
    for tb in _divisors(b):
        for gb in _divisors(npairs):
            steps = (b // tb) * (npairs // gb)
            if steps < target_steps:
                continue
            in_bytes = 2 * tb * gb * cpg * lane_in * itemsize    # xa + xb
            out_bytes = tb * gb * cpg * lane_out * itemsize
            if 2 * (in_bytes + out_bytes) > budget:              # double-buffer
                continue
            key = (in_bytes + out_bytes, tb)                     # biggest block
            if best_key is None or key > best_key:
                best_key, best = key, (tb, gb)
    return best


def _pick_tb_full(b, c, w, itemsize, budget=_VMEM_WORKSET_BUDGET):
    lane_in = _round_up(w, 128)
    lane_out = _round_up(2 * w, 128)
    target_steps = min(4, b)
    best, best_bytes = 1, 0
    for tb in _divisors(b):
        if b // tb < target_steps:
            continue
        in_bytes = tb * c * lane_in * itemsize
        out_bytes = tb * (c // 2) * lane_out * itemsize
        if 2 * (in_bytes + out_bytes) > budget:
            continue
        if in_bytes + out_bytes > best_bytes:
            best, best_bytes = tb, in_bytes + out_bytes
    return best


def _param_specs(half, w, index_map):
    return [
        pl.BlockSpec((half, half), index_map),   # cam W^T
        pl.BlockSpec((1, half), index_map),      # cam bias
        pl.BlockSpec((1, half), index_map),      # GN gamma
        pl.BlockSpec((1, half), index_map),      # GN beta
        pl.BlockSpec((w, w), index_map),         # sam W^T
        pl.BlockSpec((1, w), index_map),         # sam bias
    ]


# ---------------------------------------------------------------------------
# Host wrapper.
# ---------------------------------------------------------------------------
def sablk_forward(x, cam_w, cam_b, gn_gamma, gn_beta, sam_w, sam_b,
                  *, groups, shuffle_groups=2):
    """Fused Pallas implementation of SABlk.forward for x of shape (B, C, W)."""
    b, c, w = x.shape
    assert shuffle_groups == 2, "SABlk always uses ChannelShuffler(groups=2)"
    assert c % groups == 0, "C must divide groups (ChannelSpilit)"
    cpg = c // groups
    assert cpg % 2 == 0, "channels-per-group must be even (torch.split by half)"
    half = cpg // 2
    assert cam_w.shape == (half, half) and cam_b.shape == (half,)
    assert gn_gamma.shape == (half,) and gn_beta.shape == (half,)
    assert sam_w.shape == (w, w) and sam_b.shape == (w,), \
        "SpatialAttention.fc requires a (W, W) weight (W=64 in the module)"
    assert c % 2 == 0

    # Parameters stay f32 (attention / GroupNorm math in f32 even for bf16 x);
    # Linear weights pre-transposed so the kernel does `pooled @ W_t`.
    f32 = jnp.float32
    cam_wt = jnp.asarray(cam_w, f32).T
    sam_wt = jnp.asarray(sam_w, f32).T
    cam_b2 = jnp.asarray(cam_b, f32).reshape(1, half)
    gn_g2 = jnp.asarray(gn_gamma, f32).reshape(1, half)
    gn_b2 = jnp.asarray(gn_beta, f32).reshape(1, half)
    sam_b2 = jnp.asarray(sam_b, f32).reshape(1, w)

    itemsize = x.dtype.itemsize
    cost = pl.CostEstimate(flops=10 * b * c * w, transcendentals=b * c,
                           bytes_accessed=2 * b * c * w * itemsize)

    if groups % 2 == 0:
        npairs = groups // 2
        tb, gb = _pick_tiling_pair(b, npairs, cpg, w, itemsize)
        nch = gb * cpg
        goff = npairs // gb          # channel-block offset between the halves
        grid = (b // tb, npairs // gb)
        kernel = functools.partial(_sablk_pair_kernel, cpg=cpg)
        out = pl.pallas_call(
            kernel,
            out_shape=jax.ShapeDtypeStruct((b, c // 2, 2 * w), x.dtype),
            grid_spec=pltpu.PrefetchScalarGridSpec(
                num_scalar_prefetch=0,
                grid=grid,
                in_specs=[
                    pl.BlockSpec((tb, nch, w), lambda i, j: (i, j, 0)),
                    pl.BlockSpec((tb, nch, w), lambda i, j: (i, j + goff, 0)),
                ] + _param_specs(half, w, lambda i, j: (0, 0)),
                out_specs=pl.BlockSpec((tb, nch, 2 * w),
                                       lambda i, j: (i, j, 0)),
            ),
            compiler_params=pltpu.CompilerParams(
                dimension_semantics=("parallel", "parallel")),
            cost_estimate=cost,
        )(x, x, cam_wt, cam_b2, gn_g2, gn_b2, sam_wt, sam_b2)
    else:
        # Odd `groups`: the shuffle pairing crosses a group boundary, so fall
        # back to batch-only tiling (still lane-dense output).
        tb = _pick_tb_full(b, c, w, itemsize)
        kernel = functools.partial(_sablk_full_kernel, cpg=cpg)
        out = pl.pallas_call(
            kernel,
            out_shape=jax.ShapeDtypeStruct((b, c // 2, 2 * w), x.dtype),
            grid_spec=pltpu.PrefetchScalarGridSpec(
                num_scalar_prefetch=0,
                grid=(b // tb,),
                in_specs=[pl.BlockSpec((tb, c, w), lambda i: (i, 0, 0))]
                + _param_specs(half, w, lambda i: (0, 0)),
                out_specs=pl.BlockSpec((tb, c // 2, 2 * w),
                                       lambda i: (i, 0, 0)),
            ),
            compiler_params=pltpu.CompilerParams(
                dimension_semantics=("parallel",)),
            cost_estimate=cost,
        )(x, cam_wt, cam_b2, gn_g2, gn_b2, sam_wt, sam_b2)

    # The lane-dense (B, C/2, 2W) result is bit-identical to the shuffled
    # (B, C, W) tensor in row-major memory; this reshape is free.
    return out.reshape(b, c, w)


# ---------------------------------------------------------------------------
# Pure-JAX reference (mirrors the PyTorch module).
# ---------------------------------------------------------------------------
def sablk_reference(x, cam_w, cam_b, gn_gamma, gn_beta, sam_w, sam_b,
                    *, groups, shuffle_groups=2):
    b, c, w = x.shape
    cpg = c // groups
    half = cpg // 2
    xg = x.reshape(b * groups, cpg, w).astype(jnp.float32)
    x1, x2 = xg[:, :half, :], xg[:, half:, :]
    # ChannelAttention
    p1 = jnp.mean(x1, axis=2)
    y1 = _hardsigmoid(p1 @ jnp.asarray(cam_w, jnp.float32).T + cam_b)
    x1 = x1 * y1[:, :, None]
    # SpatialAttention
    mu = jnp.mean(x2, axis=2, keepdims=True)
    var = jnp.mean((x2 - mu) ** 2, axis=2, keepdims=True)
    xn = (x2 - mu) * jax.lax.rsqrt(var + _GN_EPS)
    xn = xn * gn_gamma[None, :, None] + gn_beta[None, :, None]
    p2 = jnp.mean(xn, axis=1)
    y2 = _hardsigmoid(p2 @ jnp.asarray(sam_w, jnp.float32).T + sam_b)
    x2 = x2 * y2[:, None, :]
    # concat + channel shuffle
    y = jnp.concatenate([x1, x2], axis=1).reshape(b, c, w)
    y = y.reshape(b, shuffle_groups, c // shuffle_groups, w)
    y = jnp.transpose(y, (0, 2, 1, 3)).reshape(b, c, w)
    return y.astype(x.dtype)


if __name__ == "__main__":
    key = jax.random.PRNGKey(0)
    # Shapes implied by the module: ChannelAttention/SpatialAttention expect 8
    # channels after the split (=> C = 16 * groups) and SpatialAttention.fc is
    # nn.Linear(64, 64) (=> W = 64).
    B, W, HALF = 2, 64, 8
    kx, ksw, ksb, kcw, kcb, kgg, kgb = jax.random.split(key, 7)

    # Parameter set 1: exactly as SABlk.__init__ leaves them
    # (cam.fc.weight = 0, cam.fc.bias = 1, GroupNorm gamma=1 / beta=0,
    #  sam.fc random).
    params_module_init = dict(
        cam_w=jnp.zeros((HALF, HALF), jnp.float32),
        cam_b=jnp.ones((HALF,), jnp.float32),
        gn_gamma=jnp.ones((HALF,), jnp.float32),
        gn_beta=jnp.zeros((HALF,), jnp.float32),
        sam_w=jax.random.normal(ksw, (W, W), jnp.float32) * 0.1,
        sam_b=jax.random.normal(ksb, (W,), jnp.float32) * 0.1,
    )
    # Parameter set 2: fully random, exercises every branch non-trivially.
    params_random = dict(
        cam_w=jax.random.normal(kcw, (HALF, HALF), jnp.float32) * 0.5,
        cam_b=jax.random.normal(kcb, (HALF,), jnp.float32) * 0.5,
        gn_gamma=1.0 + 0.1 * jax.random.normal(kgg, (HALF,), jnp.float32),
        gn_beta=0.1 * jax.random.normal(kgb, (HALF,), jnp.float32),
        sam_w=params_module_init["sam_w"],
        sam_b=params_module_init["sam_b"],
    )

    # Even-groups path (primary, group-pair tiled) with both parameter sets.
    GROUPS = 4
    C = 16 * GROUPS
    x = jax.random.normal(kx, (B, C, W), dtype=jnp.float32)
    for params in (params_module_init, params_random):
        out = jax.block_until_ready(sablk_forward(x, **params, groups=GROUPS))
        ref = sablk_reference(x, **params, groups=GROUPS)
        assert out.shape == (B, C, W) and out.dtype == x.dtype
        assert jnp.allclose(out, ref, rtol=1e-4, atol=1e-4), \
            float(jnp.max(jnp.abs(out - ref)))

    # Odd-groups fallback path (batch-tiled, lane-dense output).
    GROUPS_ODD = 3
    C_ODD = 16 * GROUPS_ODD
    x_odd = jax.random.normal(kx, (B, C_ODD, W), dtype=jnp.float32)
    out = jax.block_until_ready(
        sablk_forward(x_odd, **params_random, groups=GROUPS_ODD))
    ref = sablk_reference(x_odd, **params_random, groups=GROUPS_ODD)
    assert out.shape == (B, C_ODD, W) and out.dtype == x_odd.dtype
    assert jnp.allclose(out, ref, rtol=1e-4, atol=1e-4), \
        float(jnp.max(jnp.abs(out - ref)))

    print("KERNEL_OK")
</pallas_src>

<mosaic_0001>
module attributes {stable_mosaic.version = 11 : i64} {
  func.func @_sablk_pair_kernel(%arg0: i32, %arg1: i32, %arg2: memref<1x16x64xf32, #tpu.memory_space<vmem>>, %arg3: memref<1x16x64xf32, #tpu.memory_space<vmem>>, %arg4: memref<8x8xf32, #tpu.memory_space<vmem>>, %arg5: memref<1x8xf32, #tpu.memory_space<vmem>>, %arg6: memref<1x8xf32, #tpu.memory_space<vmem>>, %arg7: memref<1x8xf32, #tpu.memory_space<vmem>>, %arg8: memref<64x64xf32, #tpu.memory_space<vmem>>, %arg9: memref<1x64xf32, #tpu.memory_space<vmem>>, %arg10: memref<1x16x128xf32, #tpu.memory_space<vmem>>) attributes {dimension_semantics = [#tpu.dimension_semantics<parallel>, #tpu.dimension_semantics<parallel>], iteration_bounds = array<i64: 2, 2>, scalar_prefetch = 0 : i64, scratch_operands = 0 : i64, tpu.core_type = #tpu.core_type<tc>, window_params = [{transform_indices = @transform_0, window_bounds = array<i64: 1, 16, 64>}, {transform_indices = @transform_1, window_bounds = array<i64: 1, 16, 64>}, {pipeline_mode = #tpu.pipeline_mode<synchronous>, transform_indices = @transform_2, window_bounds = array<i64: 8, 8>}, {pipeline_mode = #tpu.pipeline_mode<synchronous>, transform_indices = @transform_3, window_bounds = array<i64: 1, 8>}, {pipeline_mode = #tpu.pipeline_mode<synchronous>, transform_indices = @transform_4, window_bounds = array<i64: 1, 8>}, {pipeline_mode = #tpu.pipeline_mode<synchronous>, transform_indices = @transform_5, window_bounds = array<i64: 1, 8>}, {pipeline_mode = #tpu.pipeline_mode<synchronous>, transform_indices = @transform_6, window_bounds = array<i64: 64, 64>}, {pipeline_mode = #tpu.pipeline_mode<synchronous>, transform_indices = @transform_7, window_bounds = array<i64: 1, 64>}, {transform_indices = @transform_8, window_bounds = array<i64: 1, 16, 128>}]} {
    %c0 = arith.constant 0 : index
    %c0_0 = arith.constant 0 : index
    %c0_1 = arith.constant 0 : index
    %0 = vector.load %arg2[%c0, %c0_0, %c0_1] : memref<1x16x64xf32, #tpu.memory_space<vmem>>, vector<1x16x64xf32>
    %c0_2 = arith.constant 0 : index
    %c0_3 = arith.constant 0 : index
    %1 = vector.load %arg4[%c0_2, %c0_3] : memref<8x8xf32, #tpu.memory_space<vmem>>, vector<8x8xf32>
    %c0_4 = arith.constant 0 : index
    %c0_5 = arith.constant 0 : index
    %2 = vector.load %arg5[%c0_4, %c0_5] : memref<1x8xf32, #tpu.memory_space<vmem>>, vector<1x8xf32>
    %c0_6 = arith.constant 0 : index
    %c0_7 = arith.constant 0 : index
    %3 = vector.load %arg6[%c0_6, %c0_7] : memref<1x8xf32, #tpu.memory_space<vmem>>, vector<1x8xf32>
    %c0_8 = arith.constant 0 : index
    %c0_9 = arith.constant 0 : index
    %4 = vector.load %arg7[%c0_8, %c0_9] : memref<1x8xf32, #tpu.memory_space<vmem>>, vector<1x8xf32>
    %c0_10 = arith.constant 0 : index
    %c0_11 = arith.constant 0 : index
    %5 = vector.load %arg8[%c0_10, %c0_11] : memref<64x64xf32, #tpu.memory_space<vmem>>, vector<64x64xf32>
    %c0_12 = arith.constant 0 : index
    %c0_13 = arith.constant 0 : index
    %6 = vector.load %arg9[%c0_12, %c0_13] : memref<1x64xf32, #tpu.memory_space<vmem>>, vector<1x64xf32>
    %7 = vector.extract_strided_slice %0 {offsets = [0, 0, 0], sizes = [1, 8, 64], strides = [1, 1, 1]} : vector<1x16x64xf32> to vector<1x8x64xf32>
    %8 = vector.extract_strided_slice %0 {offsets = [0, 8, 0], sizes = [1, 8, 64], strides = [1, 1, 1]} : vector<1x16x64xf32> to vector<1x8x64xf32>
    %cst = arith.constant dense<0.000000e+00> : vector<1x8xf32>
    %9 = vector.multi_reduction <add>, %7, %cst [2] : vector<1x8x64xf32> to vector<1x8xf32>
    %cst_14 = arith.constant 6.400000e+01 : f32
    %10 = vector.broadcast %cst_14 : f32 to vector<1x8xf32>
    %11 = arith.divf %9, %10 : vector<1x8xf32>
    %cst_15 = arith.constant dense<0.000000e+00> : vector<1x8xf32>
    %12 = tpu.matmul %11, %1, %cst_15 {dimension_numbers = #tpu.dot_dimension_numbers<[1], [0], [0], [1], [0, 0, 1, 1], [], []>} : vector<1x8xf32>, vector<8x8xf32>, vector<1x8xf32> -> vector<1x8xf32>
    %13 = arith.addf %12, %2 : vector<1x8xf32>
    %cst_16 = arith.constant 3.000000e+00 : f32
    %14 = vector.broadcast %cst_16 : f32 to vector<1x8xf32>
    %15 = arith.addf %13, %14 : vector<1x8xf32>
    %cst_17 = arith.constant 0.000000e+00 : f32
    %16 = vector.broadcast %cst_17 : f32 to vector<1x8xf32>
    %17 = arith.maximumf %15, %16 : vector<1x8xf32>
    %cst_18 = arith.constant 6.000000e+00 : f32
    %18 = vector.broadcast %cst_18 : f32 to vector<1x8xf32>
    %19 = arith.minimumf %17, %18 : vector<1x8xf32>
    %cst_19 = arith.constant 0.166666672 : f32
    %20 = vector.broadcast %cst_19 : f32 to vector<1x8xf32>
    %21 = arith.mulf %19, %20 : vector<1x8xf32>
    %22 = vector.shape_cast %21 : vector<1x8xf32> to vector<1x8x1xf32>
    %23 = vector.broadcast %22 : vector<1x8x1xf32> to vector<1x8x64xf32>
    %24 = arith.mulf %7, %23 : vector<1x8x64xf32>
    %cst_20 = arith.constant dense<0.000000e+00> : vector<1x8xf32>
    %25 = vector.multi_reduction <add>, %8, %cst_20 [2] : vector<1x8x64xf32> to vector<1x8xf32>
    %26 = vector.shape_cast %25 : vector<1x8xf32> to vector<1x8x1xf32>
    %cst_21 = arith.constant 6.400000e+01 : f32
    %27 = vector.broadcast %cst_21 : f32 to vector<1x8x1xf32>
    %28 = arith.divf %26, %27 : vector<1x8x1xf32>
    %29 = arith.mulf %8, %8 : vector<1x8x64xf32>
    %cst_22 = arith.constant dense<0.000000e+00> : vector<1x8xf32>
    %30 = vector.multi_reduction <add>, %29, %cst_22 [2] : vector<1x8x64xf32> to vector<1x8xf32>
    %31 = vector.shape_cast %30 : vector<1x8xf32> to vector<1x8x1xf32>
    %cst_23 = arith.constant 6.400000e+01 : f32
    %32 = vector.broadcast %cst_23 : f32 to vector<1x8x1xf32>
    %33 = arith.divf %31, %32 : vector<1x8x1xf32>
    %34 = arith.mulf %28, %28 : vector<1x8x1xf32>
    %35 = arith.subf %33, %34 : vector<1x8x1xf32>
    %cst_24 = arith.constant 0.000000e+00 : f32
    %36 = vector.broadcast %cst_24 : f32 to vector<1x8x1xf32>
    %37 = arith.maximumf %35, %36 : vector<1x8x1xf32>
    %38 = vector.broadcast %28 : vector<1x8x1xf32> to vector<1x8x64xf32>
    %39 = arith.subf %8, %38 : vector<1x8x64xf32>
    %cst_25 = arith.constant 9.99999974E-6 : f32
    %40 = vector.broadcast %cst_25 : f32 to vector<1x8x1xf32>
    %41 = arith.addf %37, %40 : vector<1x8x1xf32>
    %42 = math.rsqrt %41 : vector<1x8x1xf32>
    %43 = vector.broadcast %42 : vector<1x8x1xf32> to vector<1x8x64xf32>
    %44 = arith.mulf %39, %43 : vector<1x8x64xf32>
    %45 = vector.shape_cast %3 : vector<1x8xf32> to vector<1x8x1xf32>
    %46 = vector.broadcast %45 : vector<1x8x1xf32> to vector<1x8x64xf32>
    %47 = arith.mulf %44, %46 : vector<1x8x64xf32>
    %48 = vector.shape_cast %4 : vector<1x8xf32> to vector<1x8x1xf32>
    %49 = vector.broadcast %48 : vector<1x8x1xf32> to vector<1x8x64xf32>
    %50 = arith.addf %47, %49 : vector<1x8x64xf32>
    %cst_26 = arith.constant dense<0.000000e+00> : vector<1x64xf32>
    %51 = vector.multi_reduction <add>, %50, %cst_26 [1] : vector<1x8x64xf32> to vector<1x64xf32>
    %cst_27 = arith.constant 8.000000e+00 : f32
    %52 = vector.broadcast %cst_27 : f32 to vector<1x64xf32>
    %53 = arith.divf %51, %52 : vector<1x64xf32>
    %cst_28 = arith.constant dense<0.000000e+00> : vector<1x64xf32>
    %54 = tpu.matmul %53, %5, %cst_28 {dimension_numbers = #tpu.dot_dimension_numbers<[1], [0], [0], [1], [0, 0, 1, 1], [], []>} : vector<1x64xf32>, vector<64x64xf32>, vector<1x64xf32> -> vector<1x64xf32>
    %55 = arith.addf %54, %6 : vector<1x64xf32>
    %cst_29 = arith.constant 3.000000e+00 : f32
    %56 = vector.broadcast %cst_29 : f32 to vector<1x64xf32>
    %57 = arith.addf %55, %56 : vector<1x64xf32>
    %cst_30 = arith.constant 0.000000e+00 : f32
    %58 = vector.broadcast %cst_30 : f32 to vector<1x64xf32>
    %59 = arith.maximumf %57, %58 : vector<1x64xf32>
    %cst_31 = arith.constant 6.000000e+00 : f32
    %60 = vector.broadcast %cst_31 : f32 to vector<1x64xf32>
    %61 = arith.minimumf %59, %60 : vector<1x64xf32>
    %cst_32 = arith.constant 0.166666672 : f32
    %62 = vector.broadcast %cst_32 : f32 to vector<1x64xf32>
    %63 = arith.mulf %61, %62 : vector<1x64xf32>
    %64 = vector.shape_cast %63 : vector<1x64xf32> to vector<1x1x64xf32>
    %65 = vector.broadcast %64 : vector<1x1x64xf32> to vector<1x8x64xf32>
    %66 = arith.mulf %8, %65 : vector<1x8x64xf32>
    %67 = tpu.concatenate %24, %66 in 1 : vector<1x8x64xf32>, vector<1x8x64xf32> -> vector<1x16x64xf32>
    %c0_33 = arith.constant 0 : index
    %c0_34 = arith.constant 0 : index
    %c0_35 = arith.constant 0 : index
    %68 = vector.load %arg3[%c0_33, %c0_34, %c0_35] : memref<1x16x64xf32, #tpu.memory_space<vmem>>, vector<1x16x64xf32>
    %c0_36 = arith.constant 0 : index
    %c0_37 = arith.constant 0 : index
    %69 = vector.load %arg4[%c0_36, %c0_37] : memref<8x8xf32, #tpu.memory_space<vmem>>, vector<8x8xf32>
    %c0_38 = arith.constant 0 : index
    %c0_39 = arith.constant 0 : index
    %70 = vector.load %arg5[%c0_38, %c0_39] : memref<1x8xf32, #tpu.memory_space<vmem>>, vector<1x8xf32>
    %c0_40 = arith.constant 0 : index
    %c0_41 = arith.constant 0 : index
    %71 = vector.load %arg6[%c0_40, %c0_41] : memref<1x8xf32, #tpu.memory_space<vmem>>, vector<1x8xf32>
    %c0_42 = arith.constant 0 : index
    %c0_43 = arith.constant 0 : index
    %72 = vector.load %arg7[%c0_42, %c0_43] : memref<1x8xf32, #tpu.memory_space<vmem>>, vector<1x8xf32>
    %c0_44 = arith.constant 0 : index
    %c0_45 = arith.constant 0 : index
    %73 = vector.load %arg8[%c0_44, %c0_45] : memref<64x64xf32, #tpu.memory_space<vmem>>, vector<64x64xf32>
    %c0_46 = arith.constant 0 : index
    %c0_47 = arith.constant 0 : index
    %74 = vector.load %arg9[%c0_46, %c0_47] : memref<1x64xf32, #tpu.memory_space<vmem>>, vector<1x64xf32>
    %75 = vector.extract_strided_slice %68 {offsets = [0, 0, 0], sizes = [1, 8, 64], strides = [1, 1, 1]} : vector<1x16x64xf32> to vector<1x8x64xf32>
    %76 = vector.extract_strided_slice %68 {offsets = [0, 8, 0], sizes = [1, 8, 64], strides = [1, 1, 1]} : vector<1x16x64xf32> to vector<1x8x64xf32>
    %cst_48 = arith.constant dense<0.000000e+00> : vector<1x8xf32>
    %77 = vector.multi_reduction <add>, %75, %cst_48 [2] : vector<1x8x64xf32> to vector<1x8xf32>
    %cst_49 = arith.constant 6.400000e+01 : f32
    %78 = vector.broadcast %cst_49 : f32 to vector<1x8xf32>
    %79 = arith.divf %77, %78 : vector<1x8xf32>
    %cst_50 = arith.constant dense<0.000000e+00> : vector<1x8xf32>
    %80 = tpu.matmul %79, %69, %cst_50 {dimension_numbers = #tpu.dot_dimension_numbers<[1], [0], [0], [1], [0, 0, 1, 1], [], []>} : vector<1x8xf32>, vector<8x8xf32>, vector<1x8xf32> -> vector<1x8xf32>
    %81 = arith.addf %80, %70 : vector<1x8xf32>
    %cst_51 = arith.constant 3.000000e+00 : f32
    %82 = vector.broadcast %cst_51 : f32 to vector<1x8xf32>
    %83 = arith.addf %81, %82 : vector<1x8xf32>
    %cst_52 = arith.constant 0.000000e+00 : f32
    %84 = vector.broadcast %cst_52 : f32 to vector<1x8xf32>
    %85 = arith.maximumf %83, %84 : vector<1x8xf32>
    %cst_53 = arith.constant 6.000000e+00 : f32
    %86 = vector.broadcast %cst_53 : f32 to vector<1x8xf32>
    %87 = arith.minimumf %85, %86 : vector<1x8xf32>
    %cst_54 = arith.constant 0.166666672 : f32
    %88 = vector.broadcast %cst_54 : f32 to vector<1x8xf32>
    %89 = arith.mulf %87, %88 : vector<1x8xf32>
    %90 = vector.shape_cast %89 : vector<1x8xf32> to vector<1x8x1xf32>
    %91 = vector.broadcast %90 : vector<1x8x1xf32> to vector<1x8x64xf32>
    %92 = arith.mulf %75, %91 : vector<1x8x64xf32>
    %cst_55 = arith.constant dense<0.000000e+00> : vector<1x8xf32>
    %93 = vector.multi_reduction <add>, %76, %cst_55 [2] : vector<1x8x64xf32> to vector<1x8xf32>
    %94 = vector.shape_cast %93 : vector<1x8xf32> to vector<1x8x1xf32>
    %cst_56 = arith.constant 6.400000e+01 : f32
    %95 = vector.broadcast %cst_56 : f32 to vector<1x8x1xf32>
    %96 = arith.divf %94, %95 : vector<1x8x1xf32>
    %97 = arith.mulf %76, %76 : vector<1x8x64xf32>
    %cst_57 = arith.constant dense<0.000000e+00> : vector<1x8xf32>
    %98 = vector.multi_reduction <add>, %97, %cst_57 [2] : vector<1x8x64xf32> to vector<1x8xf32>
    %99 = vector.shape_cast %98 : vector<1x8xf32> to vector<1x8x1xf32>
    %cst_58 = arith.constant 6.400000e+01 : f32
    %100 = vector.broadcast %cst_58 : f32 to vector<1x8x1xf32>
    %101 = arith.divf %99, %100 : vector<1x8x1xf32>
    %102 = arith.mulf %96, %96 : vector<1x8x1xf32>
    %103 = arith.subf %101, %102 : vector<1x8x1xf32>
    %cst_59 = arith.constant 0.000000e+00 : f32
    %104 = vector.broadcast %cst_59 : f32 to vector<1x8x1xf32>
    %105 = arith.maximumf %103, %104 : vector<1x8x1xf32>
    %106 = vector.broadcast %96 : vector<1x8x1xf32> to vector<1x8x64xf32>
    %107 = arith.subf %76, %106 : vector<1x8x64xf32>
    %cst_60 = arith.constant 9.99999974E-6 : f32
    %108 = vector.broadcast %cst_60 : f32 to vector<1x8x1xf32>
    %109 = arith.addf %105, %108 : vector<1x8x1xf32>
    %110 = math.rsqrt %109 : vector<1x8x1xf32>
    %111 = vector.broadcast %110 : vector<1x8x1xf32> to vector<1x8x64xf32>
    %112 = arith.mulf %107, %111 : vector<1x8x64xf32>
    %113 = vector.shape_cast %71 : vector<1x8xf32> to vector<1x8x1xf32>
    %114 = vector.broadcast %113 : vector<1x8x1xf32> to vector<1x8x64xf32>
    %115 = arith.mulf %112, %114 : vector<1x8x64xf32>
    %116 = vector.shape_cast %72 : vector<1x8xf32> to vector<1x8x1xf32>
    %117 = vector.broadcast %116 : vector<1x8x1xf32> to vector<1x8x64xf32>
    %118 = arith.addf %115, %117 : vector<1x8x64xf32>
    %cst_61 = arith.constant dense<0.000000e+00> : vector<1x64xf32>
    %119 = vector.multi_reduction <add>, %118, %cst_61 [1] : vector<1x8x64xf32> to vector<1x64xf32>
    %cst_62 = arith.constant 8.000000e+00 : f32
    %120 = vector.broadcast %cst_62 : f32 to vector<1x64xf32>
    %121 = arith.divf %119, %120 : vector<1x64xf32>
    %cst_63 = arith.constant dense<0.000000e+00> : vector<1x64xf32>
    %122 = tpu.matmul %121, %73, %cst_63 {dimension_numbers = #tpu.dot_dimension_numbers<[1], [0], [0], [1], [0, 0, 1, 1], [], []>} : vector<1x64xf32>, vector<64x64xf32>, vector<1x64xf32> -> vector<1x64xf32>
    %123 = arith.addf %122, %74 : vector<1x64xf32>
    %cst_64 = arith.constant 3.000000e+00 : f32
    %124 = vector.broadcast %cst_64 : f32 to vector<1x64xf32>
    %125 = arith.addf %123, %124 : vector<1x64xf32>
    %cst_65 = arith.constant 0.000000e+00 : f32
    %126 = vector.broadcast %cst_65 : f32 to vector<1x64xf32>
    %127 = arith.maximumf %125, %126 : vector<1x64xf32>
    %cst_66 = arith.constant 6.000000e+00 : f32
    %128 = vector.broadcast %cst_66 : f32 to vector<1x64xf32>
    %129 = arith.minimumf %127, %128 : vector<1x64xf32>
    %cst_67 = arith.constant 0.166666672 : f32
    %130 = vector.broadcast %cst_67 : f32 to vector<1x64xf32>
    %131 = arith.mulf %129, %130 : vector<1x64xf32>
    %132 = vector.shape_cast %131 : vector<1x64xf32> to vector<1x1x64xf32>
    %133 = vector.broadcast %132 : vector<1x1x64xf32> to vector<1x8x64xf32>
    %134 = arith.mulf %76, %133 : vector<1x8x64xf32>
    %135 = tpu.concatenate %92, %134 in 1 : vector<1x8x64xf32>, vector<1x8x64xf32> -> vector<1x16x64xf32>
    %136 = tpu.concatenate %67, %135 in 2 : vector<1x16x64xf32>, vector<1x16x64xf32> -> vector<1x16x128xf32>
    %c0_68 = arith.constant 0 : index
    %c0_69 = arith.constant 0 : index
    %c0_70 = arith.constant 0 : index
    %137 = vector.load %arg10[%c0_68, %c0_69, %c0_70] : memref<1x16x128xf32, #tpu.memory_space<vmem>>, vector<1x16x128xf32>
    tpu.vector_store %arg10[%c0_68, %c0_69, %c0_70], %136 {strides = array<i32>} : memref<1x16x128xf32, #tpu.memory_space<vmem>>, vector<1x16x128xf32>,
    return
  }
  func.func @transform_0(%arg0: i32, %arg1: i32) -> (i32, i32, i32) {
    %c0_i32 = arith.constant 0 : i32
    %c0_i32_0 = arith.constant 0 : i32
    return %arg0, %arg1, %c0_i32 : i32, i32, i32
  }
  func.func @transform_1(%arg0: i32, %arg1: i32) -> (i32, i32, i32) {
    %c2_i32 = arith.constant 2 : i32
    %0 = arith.addi %arg1, %c2_i32 : i32
    %c0_i32 = arith.constant 0 : i32
    %c0_i32_0 = arith.constant 0 : i32
    return %arg0, %0, %c0_i32 : i32, i32, i32
  }
  func.func @transform_2(%arg0: i32, %arg1: i32) -> (i32, i32) {
    %c0_i32 = arith.constant 0 : i32
    %c0_i32_0 = arith.constant 0 : i32
    %c0_i32_1 = arith.constant 0 : i32
    return %c0_i32, %c0_i32_0 : i32, i32
  }
  func.func @transform_3(%arg0: i32, %arg1: i32) -> (i32, i32) {
    %c0_i32 = arith.constant 0 : i32
    %c0_i32_0 = arith.constant 0 : i32
    %c0_i32_1 = arith.constant 0 : i32
    return %c0_i32, %c0_i32_0 : i32, i32
  }
  func.func @transform_4(%arg0: i32, %arg1: i32) -> (i32, i32) {
    %c0_i32 = arith.constant 0 : i32
    %c0_i32_0 = arith.constant 0 : i32
    %c0_i32_1 = arith.constant 0 : i32
    return %c0_i32, %c0_i32_0 : i32, i32
  }
  func.func @transform_5(%arg0: i32, %arg1: i32) -> (i32, i32) {
    %c0_i32 = arith.constant 0 : i32
    %c0_i32_0 = arith.constant 0 : i32
    %c0_i32_1 = arith.constant 0 : i32
    return %c0_i32, %c0_i32_0 : i32, i32
  }
  func.func @transform_6(%arg0: i32, %arg1: i32) -> (i32, i32) {
    %c0_i32 = arith.constant 0 : i32
    %c0_i32_0 = arith.constant 0 : i32
    %c0_i32_1 = arith.constant 0 : i32
    return %c0_i32, %c0_i32_0 : i32, i32
  }
  func.func @transform_7(%arg0: i32, %arg1: i32) -> (i32, i32) {
    %c0_i32 = arith.constant 0 : i32
    %c0_i32_0 = arith.constant 0 : i32
    %c0_i32_1 = arith.constant 0 : i32
    return %c0_i32, %c0_i32_0 : i32, i32
  }
  func.func @transform_8(%arg0: i32, %arg1: i32) -> (i32, i32, i32) {
    %c0_i32 = arith.constant 0 : i32
    %c0_i32_0 = arith.constant 0 : i32
    return %arg0, %arg1, %c0_i32 : i32, i32, i32
  }
}

</mosaic_0001>

<bundles_post_ra>
// kernel: tpu_custom_call.1
= control target key start
LH: loop header
LB: loop body
LE: loop exit
PB: predicated region body
PF: predicated region fallthrough
CT: control target
= control target key end

     0   :  { %s1952_s0 = inlined_call_operand.hbm [shape: f32[2,64,64], index: 0, kind: input, shape index: {}]   ;;  %s1953_s1 = inlined_call_operand.hbm [shape: f32[2,64,64], index: 1, kind: input, shape index: {}]   ;;  %s1954_s2 = inlined_call_operand.hbm [shape: f32[8,8], index: 2, kind: input, shape index: {}]   ;;  %s1955_s3 = inlined_call_operand.vmem [shape: f32[1,8], index: 3, kind: input, shape index: {}]   ;;  %s1956_s4 = inlined_call_operand.vmem [shape: f32[1,8], index: 4, kind: input, shape index: {}]   ;;  %s1957_s5 = inlined_call_operand.vmem [shape: f32[1,8], index: 5, kind: input, shape index: {}]   ;;  %s1958_s6 = inlined_call_operand.hbm [shape: f32[64,64], index: 6, kind: input, shape index: {}]   ;;  %s1959_s7 = inlined_call_operand.vmem [shape: f32[1,64], index: 7, kind: input, shape index: {}]   ;;  %s1960_s8 = inlined_call_operand.hbm [shape: f32[2,32,128], index: 8, kind: output, shape index: {}]  }
   0x1   :  { %1977 = sst [smem:[#allocation23_spill]] %s1954_s2 }
   0x2   :  { %1978 = sst [smem:[#allocation24_spill]] %s1955_s3 }
   0x3   :  { %1979 = sst [smem:[#allocation25_spill]] %s1956_s4 }
   0x4   :  { %1980 = sst [smem:[#allocation26_spill]] %s1957_s5 }
   0x5   :  { %1981 = sst [smem:[#allocation27_spill]] %s1958_s6 }
   0x6   :  { %1982 = sst [smem:[#allocation28_spill]] %s1959_s7 }
   0x7   :  { %1983 = sst [smem:[#allocation29_spill]] %s1960_s8 }
   0x8   :  { %13 = vsyncpa [#allocation3], 0 }
   0x9   :  { %15 = vsyncpa [#allocation3 + $0x1], 0 }
   0xa   :  { %16 = vsyncpa [#allocation6], 0 }
   0xb   :  { %18 = vsyncpa [#allocation6 + $0x1], 0 }
   0xc   :  { %19 = vsyncpa [#allocation9], 0 }
   0xd   :  { %20 = vsyncpa [#allocation4], 0 }
   0xe   :  { %22 = vsyncpa [#allocation4 + $0x1], 0  ;;  %s1564_s27 = smov 0   ;;  %s1566_s28 = smov 0  }
   0xf   :  { %s1568_s29 = smov 0   ;;  %s1570_s30 = smov 0  }
  0x10   :  { %s1572_s9 = smov 0   ;;  %s1574_s10 = smov 0  }
  0x11   :  { %s1576_s11 = smov 0   ;;  %s1578_s12 = smov 0  }
  0x12   :  { %s1580_s13 = smov 0   ;;  %s1582_s14 = smov 0  }
  0x13   :  { %s1584_s15 = smov 0  }
  0x14 LB: > { %1984 = sst [smem:[#allocation16_spill]] %s1477_s30  ;;  %s1618_s16 = sadd.s32 4294967295, %s1505_s15   ;;  %s1505_s15 = sphi %s1584_s15, %s28_s15   ;;  %s1501_s14 = sphi %s1582_s14, %s2034_s14   ;;  %s1497_s13 = sphi %s1580_s13, %s2033_s13   ;;  %s1493_s12 = sphi %s1578_s12, %s2032_s12   ;;  %s1489_s11 = sphi %s1576_s11, %s2031_s11   ;;  %s1485_s10 = sphi %s1574_s10, %s2030_s10   ;;  %s1481_s9 = sphi %s1572_s9, %s2029_s9   ;;  %s1477_s30 = sphi %s1570_s30, %s2028_s30   ;;  %s1473_s29 = sphi %s1568_s29, %s2027_s29   ;;  %s1469_s28 = sphi %s1566_s28, %s2026_s28   ;;  %s1465_s27 = sphi %s1564_s27, %s2025_s27  }
  0x15   : > { %1985 = sst [smem:[#allocation17_spill]] %s1489_s11  ;;  %s1024_s17 = sadd.s32 4294967294, %s1505_s15  }
  0x16   : > { %1986 = sst [smem:[#allocation18_spill]] %s1493_s12  ;;  %p62_p0 = scmp.ne.s32.totalorder %s1481_s9, %s1477_s30 }
  0x17   : > { %p1961_p1 = scmp.eq.s32.totalorder %s1618_s16, 0  ;;  %p92_p2 = scmp.ne.s32.totalorder %s1469_s28, %s1465_s27 }
  0x18   : > { %p250_p4 = scmp.eq.s32.totalorder %s1024_s17, 3  ;;  %p1025_p6 = scmp.ge.s32.totalorder %s1505_s15, 1 }
  0x19   : > { %p1627_p3 = por %p1961_p1, %p62_p0  ;;  %p1633_p5 = por %p92_p2, %p1961_p1 }
  0x1a   : > { %p1638_p7 = por %p250_p4, %p62_p0  ;;  %p257_p8 = scmp.lt.s32.totalorder %s1505_s15, 5 }
  0x1b   : > { %s1987_s18 = scalar_select %p1627_p3, 1, 0 }
  0x1c   : > { %s1988_s19 = scalar_select %p1633_p5, 1, 0 }
  0x1d   : > { %s1990_s20 = scalar_select %p1638_p7, 1, 0 }
  0x1e   : > { %1989 = sst [smem:[#allocation19_spill]] %s1988_s19  ;;  %p1643_p9 = pnand %p1025_p6, %p257_p8 }
  0x1f   : > { %1991 = sst [smem:[#allocation20_spill]] %s1990_s20  ;;  %s1507_s22 = smov [#allocation7]  }
  0x20   : > { %s1992_s21 = scalar_select %p1643_p9, 1, 0 }
  0x21   : > { %s270_s23 = sshll.u32 %s1507_s22, 4  ;;  %p1139_p10 = pneg %p1643_p9  ;;  %s271_s23 = int_to_ptr.vmem [resolvable:$true] %s270_s23 }
  0x22   : > { %s1508_s24 = smov [#allocation8]   ;;  %s1275_s27 = scalar_lea.vmem %s271_s23, 128 }
  0x23   : > { %s289_s25 = sshll.u32 %s1508_s24, 4  ;;  %p1651_p11 = pnand %p1139_p10, %p1961_p1  ;;  %s290_s25 = int_to_ptr.vmem [resolvable:$true] %s289_s25 }
  0x24   : > { %p1276_p13 = scmp.ne.s32.totalorder %s271_s23, %s1275_s27  ;;  %p1283_p4 = scmp.lt.s32.totalorder %s271_s23, %s271_s23 }
  0x25   : > { %p1266_p12 = pneg %p1651_p11  ;;  %p1284_p6 = scmp.lt.s32.totalorder %s1275_s27, %s1275_s27 }
  0x27   : > { %p1278_p0 = pnand %p1276_p13, %p1266_p12  ;;  %p1285_p8 = por %p1284_p6, %p1283_p4 }
  0x29   : > { %p1279_p2 = pneg %p1278_p0 }
  0x2b   : > { %p1286_p7 = pnand %p1285_p8, %p1279_p2 }
  0x2d   : > { %1289 = shalt.err (!%p1286_p7)
}
  0x2e   : > { %s1994_s2 = sld [smem:[#allocation23_spill]]  ;;  %s1301_s24 = scalar_lea.vmem %s290_s25, 1024 }
  0x2f   : > { %p1302_p10 = scmp.ne.s32.totalorder %s290_s25, %s1301_s24  ;;  %p1309_p13 = scmp.lt.s32.totalorder %s290_s25, %s290_s25 }
  0x30   : > { %p1310_p0 = scmp.lt.s32.totalorder %s1301_s24, %s1301_s24 }
  0x31   : > { %p1304_p1 = pnand %p1302_p10, %p1266_p12 }
  0x32   : > { %p1311_p3 = por %p1310_p0, %p1309_p13 }
  0x33   : > { %p1305_p5 = pneg %p1304_p1 }
  0x34   : > { %1142 = dma.hbm_to_vmem [thread:$0]  (!%p1651_p11), %s1994_s2, 128, %s271_s23, [#allocation6]  }
  0x35   : > { %p1312_p9 = pnand %p1311_p3, %p1305_p5 }
  0x37   : > { %1315 = shalt.err (!%p1312_p9)
}
  0x38   : > { %s1966_s27 = smov 128   ;;  %s1968_s23 = smov 8  }
  0x39   : > { %s1995_s6 = sld [smem:[#allocation27_spill]]  ;;  %p244_p1 = scmp.eq.s32.totalorder %s1618_s16, 3 }
  0x3a   : > { %s37_s24 = sadd.s32 1, %s1497_s13  ;;  %s40_s2 = sadd.s32 1, %s1501_s14 }
  0x3b   : > { %p38_p3 = scmp.ge.s32.totalorder %s37_s24, 2  ;;  %s49_s20 = sadd.s32 1, %s1485_s10 }
  0x3c   : > { %p56_p5 = scmp.ne.s32.totalorder %s1485_s10, %s1481_s9  ;;  %p57_p7 = scmp.eq.s32.totalorder %s1505_s15, 0 }
  0x3d   : > { %s2036_s24 = smov (%p38_p3, %s37_s24), 0  ;;  %s2038_s2 = smov (!%p38_p3, %s40_s2), %s1501_s14 }
  0x3e   : > { %1996 = sst [smem:[#allocation21_spill]] %s2036_s24  ;;  %s45_s26 = ssub.s32 %s1497_s13, %s2036_s24 }
  0x3f   : > { %1145 = dma.hbm_to_vmem [thread:$0]  (!%p1651_p11), %s1995_s6, 1024, %s290_s25, [#allocation9], %s1966_s27, %s1966_s27, %s1968_s23  }
  0x40   : > { %p42_p9 = scmp.ge.s32.totalorder %s2038_s2, 2  ;;  %s72_s25 = sadd.s32 2, %s1497_s13 }
  0x41   : > { %s73_s17 = sadd.s32 2, %s2036_s24  ;;  %p1692_p11 = por %p244_p1, %p56_p5 }
  0x42   : > { %s2040_s2 = smov (%p42_p9, %s2038_s2), 0  ;;  %p1700_p12 = por %p57_p7, %p56_p5 }
  0x43   : > { %s1997_s22 = scalar_select %p1692_p11, 1, 0 }
  0x44   : > { %s75_s23 = ssub.s32 %s72_s25, %s73_s17  ;;  %s44_s6 = ssub.s32 %s1501_s14, %s2040_s2 }
  0x45   : > { %1998 = sst [smem:[#allocation22_spill]] %s1997_s22  ;;  %s306_s30 = sand.u32 1, %s1485_s10  }
  0x46   : > { %s46_s8 = sor.u32 %s45_s26, %s44_s6  ;;  %p1159_p2 = scmp.lt.s32.totalorder %s1505_s15, 4 }
  0x47   : > { %p47_p4 = scmp.eq.s32.totalorder %s46_s8, 0  ;;  %s76_s24 = sor.u32 %s75_s23, %s44_s6 }
  0x48   : > { %s1029_s12 = sshll.u32 %s306_s30, 4  ;;  %s1030_s22 = sshll.u32 %s1497_s13, 1 }
  0x49   : > { %s1709_s11 = scalar_select %p47_p4, %s1485_s10, %s49_s20  }
  0x4a   : > { %s1031_s7 = sshll.u32 %s1501_s14, 3  ;;  %s310_s3 = scalar_lea.vmem [#allocation2], %s1029_s12 }
  0x4b   : > { %s319_s5 = sshll.u32 %s310_s3, 4  ;;  %s316_s4 = sadd.s32 %s1031_s7, %s1030_s22  ;;  %s320_s5 = int_to_ptr.vmem [resolvable:$true] %s319_s5 }
  0x4c   : > { %s1032_s19 = sshll.u32 %s316_s4, 7  ;;  %p1717_p6 = pnand %p1159_p2, %p1700_p12 }
  0x4d   : > { %s318_s6 = scalar_lea.hbm %s1952_s0, %s1032_s19  ;;  %s1727_s23 = scalar_lea.hbm %s1953_s1, %s1032_s19 }
  0x4e   : > { %p1729_p8 = scmp.eq.s32.totalorder %s76_s24, 0  ;;  %s307_s4 = scalar_lea.sflag [#allocation3], %s306_s30 }
  0x4f   : > { %p1318_p10 = pneg %p1717_p6  ;;  %s1329_s7 = scalar_lea.vmem %s320_s5, 256 }
  0x50   : > { %p1330_p13 = scmp.ne.s32.totalorder %s320_s5, %s1329_s7  ;;  %s1511_s12 = smov [#allocation2]  }
  0x51   : > { %s1334_s27 = sshll.u32 %s1511_s12, 4  ;;  %s1335_s27 = int_to_ptr.vmem [resolvable:$false] %s1334_s27 }
  0x52   : > { %p1332_p0 = pnand %p1330_p13, %p1318_p10  ;;  %s1336_s22 = scalar_lea.vmem %s1335_s27, 512 }
  0x53   : > { %p1337_p3 = scmp.lt.s32.totalorder %s320_s5, %s1335_s27  ;;  %p1338_p5 = scmp.lt.s32.totalorder %s1336_s22, %s1329_s7 }
  0x54   : > { %p1333_p1 = pneg %p1332_p0 }
  0x55   : > { %p1339_p9 = por %p1338_p5, %p1337_p3 }
  0x57   : > { %p1340_p12 = pnand %p1339_p9, %p1333_p1 }
  0x59   : > { %1343 = shalt.err (!%p1340_p12)
}
  0x5a   : > { %s2002_s19 = smov 8   ;;  %s2003_s24 = smov 128  }
  0x5b   : > { %1149 = dma.hbm_to_vmem [thread:$0]  (!%p1717_p6), %s318_s6, 256, %s320_s5, %s307_s4, %s2003_s24, %s2003_s24, %s2002_s19  }
  0x5c   : > { %s934_s30 = scalar_lea.hbm %s1727_s23, 512  ;;  %s329_s26 = sand.u32 1, %s1505_s15  }
  0x5d   : > { %s79_s17 = sadd.s32 1, %s1473_s29  ;;  %p86_p4 = scmp.ne.s32.totalorder %s1473_s29, %s1469_s28 }
  0x5e   : > { %s1748_s25 = scalar_select %p1729_p8, %s1473_s29, %s79_s17  }
  0x5f   : > { %p88_p10 = por %p86_p4, %p57_p7  ;;  %s331_s8 = sand.u32 1, %s1473_s29  }
  0x60   : > { %s1033_s20 = sshll.u32 %s331_s8, 4  ;;  %s330_s5 = scalar_lea.sflag [#allocation6], %s329_s26 }
  0x61   : > { %p1755_p13 = pnand %p1159_p2, %p88_p10  ;;  %s333_s12 = scalar_lea.vmem [#allocation5], %s1033_s20 }
  0x62   : > { %s343_s27 = sshll.u32 %s333_s12, 4  ;;  %s1512_s3 = smov [#allocation5]   ;;  %s344_s27 = int_to_ptr.vmem [resolvable:$true] %s343_s27 }
  0x63   : > { %p1346_p6 = pneg %p1755_p13  ;;  %s1357_s6 = scalar_lea.vmem %s344_s27, 256 }
  0x64   : > { %p1358_p0 = scmp.ne.s32.totalorder %s344_s27, %s1357_s6  ;;  %s1362_s4 = sshll.u32 %s1512_s3, 4  ;;  %s1363_s4 = int_to_ptr.vmem [resolvable:$false] %s1362_s4 }
  0x65   : > { %s1364_s22 = scalar_lea.vmem %s1363_s4, 512  ;;  %p1365_p7 = scmp.lt.s32.totalorder %s344_s27, %s1363_s4 }
  0x66   : > { %p1360_p8 = pnand %p1358_p0, %p1346_p6  ;;  %p1366_p2 = scmp.lt.s32.totalorder %s1364_s22, %s1357_s6 }
  0x68   : > { %p1361_p1 = pneg %p1360_p8  ;;  %p1367_p3 = por %p1366_p2, %p1365_p7 }
  0x6a   : > { %p1368_p5 = pnand %p1367_p3, %p1361_p1 }
  0x6c   : > { %1371 = shalt.err (!%p1368_p5)
}
  0x6d   : > { %1152 = dma.hbm_to_vmem [thread:$0]  (!%p1755_p13), %s934_s30, 256, %s344_s27, %s330_s5, %s2003_s24, %s2003_s24, %s2002_s19  }
  0x6e   : > { %p2005_p9 = scmp.ne.s32.totalorder %s1992_s21, 0 }
  0x6f   : > { %s1771_s26 = sand.u32 (!%p2005_p9), 1, %s1481_s9   ;;  %p2006_p12 = scmp.ne.s32.totalorder (!%p2005_p9), %s1987_s18, 0 }
  0x70   : > { %355 = sbr.rel (%p2005_p9) target bundleno = 733 (0x2dd), region = 52  ;;  %s1038_s17 = sshll.u32 (!%p2005_p9), %s1771_s26, 4 }
  0x71   : > { %s358_s8 = scalar_lea.sflag (!%p2005_p9), [#allocation3], %s1771_s26  ;;  %s1777_s20 = scalar_lea.vmem (!%p2005_p9), [#allocation2], %s1038_s17 }
  0x75   : > { %1444 = dma.done.wait (%p2006_p12), %s358_s8, 256  }
  0x76   : > { %1446 = vsyncadd (%p2006_p12), %s358_s8, 4294967040  ;;  %s2007_s21 = sld [smem:[#allocation19_spill]]  ;;  %s366_s23 = sand.u32 1, %s1618_s16  }
  0x77   : > { %s368_s19 = sand.u32 1, %s1469_s28   ;;  %s367_s30 = scalar_lea.sflag [#allocation6], %s366_s23 }
  0x78   : > { %s1039_s24 = sshll.u32 %s368_s19, 4 }
  0x79   : > { %s370_s7 = scalar_lea.vmem [#allocation5], %s1039_s24 }
  0x7c   : > { %p2008_p4 = scmp.ne.s32.totalorder %s2007_s21, 0 }
  0x7e   : > { %1448 = dma.done.wait (%p2008_p4), %s367_s30, 256  }
  0x7f   : > { %1450 = vsyncadd (%p2008_p4), %s367_s30, 4294967040  ;;  %p2009_p10 = scmp.eq.s32.totalorder %s1618_s16, 0 }
  0x81   : > { %1452 = dma.done.wait (%p2009_p10), [#allocation6], 128   ;;  %p2010_p13 = pmov %p2009_p10 }
  0x82   : > { %p2011_p6 = pmov %p2009_p10 }
  0x83   : > { %1454 = vsyncadd (%p2010_p13), [#allocation6], 4294967168 }
  0x84   : > { %1456 = dma.done.wait (%p2011_p6), [#allocation9], 1024   ;;  %p2012_p0 = pmov %p2011_p6 }
  0x85   : > { %vm435_vm0 = vcmask 523264   ;;  %v1797_v0 = vld [vmem:[%s370_s7] sm:$0xff]  ;;  %v1799_v1 = vld [vmem:[%s370_s7 + $0x8] sm:$0xff]  ;;  %v1513_v6 = vmov 0.0   ;;  %vm1514_vm1 = vmmov 0   ;;  %s2013_s12 = sld [smem:[#allocation25_spill]]  ;;  %v442_v16 = vlaneseq }
  0x86   : > { %1458 = vsyncadd (%p2012_p0), [#allocation9], 4294966272  ;;  %v658_v2 = vsel %vm435_vm0, %v1797_v0, 0.0  ;;  %v755_v3 = vmul.f32 %v1799_v1, %v1799_v1  ;;  %v751_v5 = vsel %vm435_vm0, %v1799_v1, 0.0  ;;  %1101 = vmatprep.subr.mxu0 %v1513_v6  ;;  %v422_v7 = vld [vmem:[#allocation7] sm:$0xff]  ;;  %1077 = vmatprep.subr.mxu1 %v1513_v6  ;;  %s2014_s6 = sld [smem:[#allocation26_spill]] }
  0x87   : > { %659 = vadd.xlane.f32.xlu0 %v658_v2  ;;  %1102 = vmatpush3.msra.mxu0 %v422_v7  ;;  %v1823_v10 = vld [vmem:[%s1777_s20] sm:$0xff]  ;;  %v1826_v11 = vld [vmem:[%s1777_s20 + $0x8] sm:$0xff]  ;;  %v443_v17 = vand.u32 127, %v442_v16  ;;  %v1835_v18 = vshrl.u32 %v442_v16, 7  ;;  %vm448_vm2 = vcmask 64512   ;;  %s2015_s22 = sld [smem:[#allocation24_spill]] }
  0x88   : > { %v756_v4 = vsel %vm435_vm0, %v755_v3, 0.0  ;;  %1103 = vmatprep.mubr.msk.f32.mxu0 %vm1514_vm1, %v1513_v6  ;;  %1106 = vmatprep.subr.mxu0 %v1513_v6  ;;  %v436_v12 = vsel %vm435_vm0, %v1823_v10, 0.0  ;;  %v537_v13 = vmul.f32 %v1826_v11, %v1826_v11  ;;  %v533_v14 = vsel %vm435_vm0, %v1826_v11, 0.0  ;;  %v433_v24 = vld [vmem:[#allocation8 + $0x38] sm:$0xff]  ;;  %v432_v28 = vld [vmem:[#allocation8 + $0x30] sm:$0xff]  ;;  %v431_v30 = vld [vmem:[#allocation8 + $0x28] sm:$0xff] }
  0x89   : > { %757 = vadd.xlane.f32.xlu1 %v756_v4  ;;  %1078 = vmatpush3.msra.mxu1 %v422_v7  ;;  %v1838_v19 = vsub.s32 %v443_v17, %v1835_v18  ;;  %v430_v32 = vld [vmem:[#allocation8 + $0x20] sm:$0xff]  ;;  %v429_v34 = vld [vmem:[#allocation8 + $0x18] sm:$0xff]  ;;  %v428_v36 = vld [vmem:[#allocation8 + $0x10] sm:$0xff]  ;;  %s2016_s21 = sld [smem:[#allocation28_spill]]  ;;  %s1515_s24 = smov 64  }
  0x8a   : > { %1079 = vmatprep.mubr.msk.f32.mxu1 %vm1514_vm1, %v1513_v6  ;;  %1082 = vmatprep.subr.mxu1 %v1513_v6  ;;  %v538_v15 = vsel %vm435_vm0, %v537_v13, 0.0  ;;  %v427_v37 = vld [vmem:[#allocation8 + $0x8] sm:$0xff]  ;;  %v426_v38 = vld [vmem:[#allocation8] sm:$0xff]  ;;  %s2017_s23 = sld [smem:[#allocation17_spill]]  ;;  %s1516_s20 = smov [#allocation10]  }
  0x8b   : > { %752 = vadd.xlane.f32.xlu0 %v751_v5  ;;  %v1044_v8 = vld [vmem:[%s2013_s12] ss:$0 sm:$0xff]  ;;  %s2018_s19 = sld [smem:[#allocation18_spill]]  ;;  %s415_s12 = scalar_lea.vmem [#allocation10], %s1038_s17 }
  0x8c   : > { %v1045_v9 = vld [vmem:[%s2014_s6] ss:$0 sm:$0xff]  ;;  %s887_s27 = sshll.u32 %s415_s12, 4  ;;  %s2020_s4 = sld [smem:[#allocation29_spill]]  ;;  %s1883_s27 = int_to_ptr.vmem [resolvable:$true] %s887_s27 }
  0x8d   : > { %s872_s17 = scalar_lea.sflag [#allocation4], %s1771_s26  ;;  %s1373_s8 = scalar_lea.vmem %s1883_s27, 256 }
  0x8e   : > { %p1374_p8 = scmp.ne.s32.totalorder %s1883_s27, %s1373_s8 }
  0x90   : > { %s1050_s30 = sshll.u32 %s2017_s23, 1  ;;  %p1375_p1 = pnand %p1374_p8, %p1692_p11 }
  0x91   : > { %s1051_s7 = sshll.u32 %s2018_s19, 2 }
  0x92   : > { %s884_s16 = sadd.s32 %s1051_s7, %s1050_s30  ;;  %p1376_p7 = pneg %p1375_p1 }
  0x93   : > { %s1052_s5 = sshll.u32 %s884_s16, 7 }
  0x9a   : > { %554 = vbcast.lane.b32.xlu1 %v1044_v8, 256 }
  0xa1   : > { %562 = vbcast.lane.b32.xlu0 %v1045_v9, 256 }
  0xbe   : > { %437 = vadd.xlane.f32.xlu1 %v436_v12 }
  0xc0   : > { %534 = vadd.xlane.f32.xlu0 %v533_v14 }
  0xc2   : > { %539 = vadd.xlane.f32.xlu1 %v538_v15 }
 0x110   : > { %v660_v20 = vpop.xlane.xlu0 %659 }
 0x111   : > { %v661_v21 = vmul.f32 0.015625, %v660_v20 }
 0x112   : > { %v758_v22 = vpop.xlane.xlu1 %757 }
 0x113   : > { %v666_v23 = vrot.slane %v661_v21, %v1838_v19  ;;  %v759_v27 = vmul.f32 0.015625, %v758_v22 }
 0x114   : > { %v753_v25 = vpop.xlane.xlu0 %752 }
 0x115   : > { %1104 = vmatmul.mubr.msk.f32.vlgmr.msra.gmra.mxu0 %vm448_vm2, %v666_v23  ;;  %v754_v26 = vmul.f32 0.015625, %v753_v25  ;;  %v527_v25 = vsub.s32 0, %v1835_v18 }
 0x116   : > { %1107 = vmatpush3.msra.mxu0 %v433_v24  ;;  %1122 = vmatprep.mubr.msk.f32.mxu0 %vm1514_vm1, %v1513_v6  ;;  %v555_v41 = vpop.permute.xlu1 %554 }
 0x117   : > { %v760_v29 = vmul.f32 %v754_v26, %v754_v26  ;;  %1108 = vmatprep.subr.mxu0 %v1513_v6  ;;  %v763_v39 = vsub.f32 %v1799_v1, %v754_v26 }
 0x118   : > { %1109 = vmatpush3.msra.mxu0 %v432_v28  ;;  %v563_v43 = vpop.permute.xlu0 %562 }
 0x119   : > { %v761_v31 = vsub.f32 %v759_v27, %v760_v29  ;;  %1110 = vmatprep.subr.mxu0 %v1513_v6 }
 0x11a   : > { %1111 = vmatpush3.msra.mxu0 %v431_v30 }
 0x11b   : > { %v762_v33 = vmax.f32 %v761_v31, 0.0  ;;  %1112 = vmatprep.subr.mxu0 %v1513_v6 }
 0x11c   : > { %1113 = vmatpush3.msra.mxu0 %v430_v32 }
 0x11d   : > { %v764_v35 = vadd.f32 1e-05, %v762_v33  ;;  %1114 = vmatprep.subr.mxu0 %v1513_v6 }
 0x11e   : > { %1115 = vmatpush3.msra.mxu0 %v429_v34 }
 0x11f   : > { %1260 = vrsqrt.f32 %v764_v35  ;;  %1116 = vmatprep.subr.mxu0 %v1513_v6 }
 0x120   : > { %1117 = vmatpush3.msra.mxu0 %v428_v36 }
 0x121   : > { %1118 = vmatprep.subr.mxu0 %v1513_v6 }
 0x122   : > { %1119 = vmatpush3.msra.mxu0 %v427_v37 }
 0x123   : > { %1120 = vmatprep.subr.mxu0 %v1513_v6 }
 0x124   : > { %1121 = vmatpush3.msra.mxu0 %v426_v38 }
 0x12c   : > { %v1261_v40 = vpop.eup %1260 }
 0x12d   : > { %v766_v42 = vmul.f32 %v1261_v40, %v763_v39  ;;  %v434_v39 = vld [vmem:[%s2016_s21] sm:$0x1]  ;;  %s1377_s21 = sshll.u32 %s1516_s20, 4  ;;  %s1378_s21 = int_to_ptr.vmem [resolvable:$false] %s1377_s21 }
 0x12e   : > { %s1379_s23 = scalar_lea.vmem %s1378_s21, 512  ;;  %p1380_p2 = scmp.lt.s32.totalorder %s1883_s27, %s1378_s21 }
 0x12f   : > { %v767_v44 = vmul.f32 %v766_v42, %v555_v41  ;;  %p1381_p3 = scmp.lt.s32.totalorder %s1379_s23, %s1373_s8 }
 0x131   : > { %v768_v45 = vadd.f32 %v767_v44, %v563_v43  ;;  %p1382_p5 = por %p1381_p3, %p1380_p2 }
 0x133   : > { %v769_v46 = vsel %vm435_vm0, %v768_v45, 0.0  ;;  %p1383_p9 = pnand %p1382_p5, %p1376_p7 }
 0x134   : > { %v770_v47 = vrot.slane %v769_v46, 4 }
 0x136   : > { %v771_v48 = vadd.f32 %v770_v47, %v769_v46 }
 0x138   : > { %v772_v49 = vrot.slane %v771_v48, 2 }
 0x13a   : > { %v773_v50 = vadd.f32 %v772_v49, %v771_v48 }
 0x13c   : > { %v774_v51 = vrot.slane %v773_v50, 1 }
 0x13e   : > { %v775_v52 = vadd.f32 %v774_v51, %v773_v50 }
 0x140   : > { %v776_v53 = vmul.f32 0.125, %v775_v52 }
 0x142   : > { %1123 = vmatmul.mubr.msk.f32.vlgmr.msra.gmra.mxu0 %vm435_vm0, %v776_v53 }
 0x147   : > { %v438_v54 = vpop.xlane.xlu1 %437 }
 0x148   : > { %v440_v55 = vmul.f32 0.015625, %v438_v54 }
 0x149   : > { %v535_v56 = vpop.xlane.xlu0 %534 }
 0x14a   : > { %v447_v57 = vrot.slane %v440_v55, %v1838_v19  ;;  %v536_v58 = vmul.f32 0.015625, %v535_v56 }
 0x14b   : > { %v540_v59 = vpop.xlane.xlu1 %539 }
 0x14c   : > { %v542_v60 = vmul.f32 %v536_v58, %v536_v58  ;;  %v541_v61 = vmul.f32 0.015625, %v540_v59  ;;  %1080 = vmatmul.mubr.msk.f32.vlgmr.msra.gmra.mxu1 %vm448_vm2, %v447_v57  ;;  %v545_v3 = vsub.f32 %v1826_v11, %v536_v58 }
 0x14d   : > { %1083 = vmatpush3.msra.mxu1 %v433_v24  ;;  %1098 = vmatprep.mubr.msk.f32.mxu1 %vm1514_vm1, %v1513_v6 }
 0x14e   : > { %v543_v62 = vsub.f32 %v541_v61, %v542_v60  ;;  %1084 = vmatprep.subr.mxu1 %v1513_v6 }
 0x14f   : > { %1085 = vmatpush3.msra.mxu1 %v432_v28 }
 0x150   : > { %v544_v63 = vmax.f32 %v543_v62, 0.0  ;;  %1086 = vmatprep.subr.mxu1 %v1513_v6 }
 0x151   : > { %1087 = vmatpush3.msra.mxu1 %v431_v30 }
 0x152   : > { %v546_v2 = vadd.f32 1e-05, %v544_v63  ;;  %1088 = vmatprep.subr.mxu1 %v1513_v6 }
 0x153   : > { %1089 = vmatpush3.msra.mxu1 %v430_v32 }
 0x154   : > { %1262 = vrsqrt.f32 %v546_v2  ;;  %1090 = vmatprep.subr.mxu1 %v1513_v6 }
 0x155   : > { %1091 = vmatpush3.msra.mxu1 %v429_v34 }
 0x156   : > { %1092 = vmatprep.subr.mxu1 %v1513_v6 }
 0x157   : > { %1093 = vmatpush3.msra.mxu1 %v428_v36 }
 0x158   : > { %1094 = vmatprep.subr.mxu1 %v1513_v6 }
 0x159   : > { %1095 = vmatpush3.msra.mxu1 %v427_v37 }
 0x15a   : > { %1096 = vmatprep.subr.mxu1 %v1513_v6  ;;  %v423_v6 = vld [vmem:[%s2015_s22] sm:$0x1]  ;;  %s1889_s22 = scalar_lea.hbm %s2020_s4, %s1052_s5 }
 0x15b   : > { %1097 = vmatpush3.msra.mxu1 %v426_v38 }
 0x161   : > { %v1263_v4 = vpop.eup %1262 }
 0x162   : > { %v548_v5 = vmul.f32 %v1263_v4, %v545_v3 }
 0x164   : > { %v556_v7 = vmul.f32 %v555_v41, %v548_v5 }
 0x166   : > { %v564_v8 = vadd.f32 %v563_v43, %v556_v7 }
 0x168   : > { %v565_v9 = vsel %vm435_vm0, %v564_v8, 0.0 }
 0x169   : > { %v566_v12 = vrot.slane %v565_v9, 4 }
 0x16b   : > { %v567_v13 = vadd.f32 %v566_v12, %v565_v9 }
 0x16d   : > { %v568_v14 = vrot.slane %v567_v13, 2 }
 0x16f   : > { %v569_v15 = vadd.f32 %v568_v14, %v567_v13 }
 0x171   : > { %v570_v16 = vrot.slane %v569_v15, 1 }
 0x173   : > { %v571_v17 = vadd.f32 %v570_v16, %v569_v15 }
 0x175   : > { %v573_v19 = vmul.f32 0.125, %v571_v17 }
 0x177   : > { %1099 = vmatmul.mubr.msk.f32.vlgmr.msra.gmra.mxu1 %vm435_vm0, %v573_v19 }
 0x1d5   : > { %v735_v20 = vpop.f32.mrf.mxu0 }
 0x1d6   : > { %v736_v21 = vadd.f32 %v735_v20, %v423_v6 }
 0x1d7   : > { %v1105_v22 = vpop.f32.mrf.mxu0 }
 0x1d8   : > { %v739_v23 = vadd.f32 3.0, %v736_v21 }
 0x1da   : > { %v740_v24 = vmax.f32 %v739_v23, 0.0 }
 0x1dc   : > { %v741_v26 = vmin.f32 %v740_v24, 6.0 }
 0x1de   : > { %v742_v27 = vmul.f32 0.16666667, %v741_v26 }
 0x1e0   : > { %v746_v28 = vrot.slane %v742_v27, %v527_v25 }
 0x1e2   : > { %748 = vbcast.lane.b32.xlu0 %v746_v28, 256 }
 0x202   : > { %v846_v29 = vpop.f32.mrf.mxu0 }
 0x203   : > { %v847_v42 = vadd.f32 %v846_v29, %v434_v39 }
 0x204   : > { %v1124_v30 = vpop.f32.mrf.mxu0 }
 0x205   : > { %v850_v43 = vadd.f32 3.0, %v847_v42 }
 0x207   : > { %v851_v44 = vmax.f32 %v850_v43, 0.0 }
 0x209   : > { %v852_v45 = vmin.f32 %v851_v44, 6.0 }
 0x20b   : > { %v853_v46 = vmul.f32 0.16666667, %v852_v45 }
 0x20c   : > { %v517_v31 = vpop.f32.mrf.mxu1 }
 0x20d   : > { %v518_v32 = vadd.f32 %v517_v31, %v423_v6  ;;  %v857_v48 = vrot.slane %v853_v46, %v527_v25 }
 0x20e   : > { %v1081_v33 = vpop.f32.mrf.mxu1 }
 0x20f   : > { %v521_v34 = vadd.f32 3.0, %v518_v32  ;;  %v858_v50 = vmul.f32 %v857_v48, %v1799_v1 }
 0x211   : > { %v522_v35 = vmax.f32 %v521_v34, 0.0 }
 0x213   : > { %v523_v36 = vmin.f32 %v522_v35, 6.0 }
 0x215   : > { %v524_v37 = vmul.f32 0.16666667, %v523_v36 }
 0x217   : > { %v528_v38 = vrot.slane %v524_v37, %v527_v25 }
 0x219   : > { %530 = vbcast.lane.b32.xlu1 %v528_v38, 256 }
 0x237   : > { %v643_v18 = vpop.f32.mrf.mxu1 }
 0x238   : > { %v644_v40 = vadd.f32 %v643_v18, %v434_v39 }
 0x239   : > { %v1100_v41 = vpop.f32.mrf.mxu1 }
 0x23a   : > { %v647_v51 = vadd.f32 3.0, %v644_v40 }
 0x23c   : > { %v648_v52 = vmax.f32 %v647_v51, 0.0 }
 0x23e   : > { %v649_v53 = vmin.f32 %v648_v52, 6.0 }
 0x240   : > { %v650_v55 = vmul.f32 0.16666667, %v649_v53 }
 0x242   : > { %v654_v56 = vrot.slane %v650_v55, %v527_v25 }
 0x244   : > { %v655_v58 = vmul.f32 %v654_v56, %v1826_v11 }
 0x254   : > { %v749_v47 = vpop.permute.xlu0 %748 }
 0x255   : > { %v750_v49 = vmul.f32 %v749_v47, %v1797_v0 }
 0x257   : > { %861 = vrot.lane.b32.xlu1 %v750_v49, %s1515_s24 }
 0x25b   : > { %863 = vrot.lane.b32.xlu1 %v858_v50, %s1515_s24 }
 0x28b   : > { %v531_v54 = vpop.permute.xlu1 %530 }
 0x28c   : > { %v532_v57 = vmul.f32 %v531_v54, %v1823_v10 }
 0x2c9   : > { %v862_v0 = vpop.permute.xlu1 %861 }
 0x2ca   : > { %v867_v1 = vsel %vm435_vm0, %v532_v57, %v862_v0 }
 0x2cb   : > { %869 = vst [vmem:[%s415_s12] sm:$0xff] %v867_v1 }
 0x2cd   : > { %v864_v10 = vpop.permute.xlu1 %863 }
 0x2ce   : > { %v868_v59 = vsel %vm435_vm0, %v655_v58, %v864_v10 }
 0x2cf   : > { %870 = vst [vmem:[%s415_s12 + $0x8] sm:$0xff] %v868_v59 }
 0x2d0   : > { %1386 = shalt.err (!%p1383_p9)
}
 0x2d1   : > { %s1387_s19 = scalar_lea.hbm %s1889_s22, 256  ;;  %s1391_s7 = scalar_lea.hbm %s2020_s4, 1024 }
 0x2d2   : > { %p1388_p12 = scmp.ne.s32.totalorder %s1889_s22, %s1387_s19  ;;  %p1392_p13 = scmp.lt.s32.totalorder %s1889_s22, %s2020_s4 }
 0x2d3   : > { %p1393_p6 = scmp.lt.s32.totalorder %s1391_s7, %s1387_s19 }
 0x2d4   : > { %p1389_p4 = pnand %p1388_p12, %p1692_p11 }
 0x2d5   : > { %p1394_p0 = por %p1393_p6, %p1392_p13 }
 0x2d6   : > { %p1390_p10 = pneg %p1389_p4 }
 0x2d8   : > { %p1395_p8 = pnand %p1394_p0, %p1390_p10 }
 0x2da   : > { %1398 = shalt.err (!%p1395_p8)
}
 0x2db   : > { %s1517_s5 = smov 128   ;;  %s1518_s6 = smov 8  }
 0x2dc   : > { %1137 = dma.vmem_to_hbm [thread:$0]  (%p1692_p11), %s1883_s27, 256, %s1889_s22, %s872_s17, %s1517_s5, %s1517_s5, %s1518_s6  }
 0x2dd PF: > { %s2021_s3 = sld [smem:[#allocation16_spill]]  ;;  %p1162_p1 = scmp.ge.s32.totalorder %s1505_s15, 2 }
 0x2de   : > { %s2022_s8 = sld [smem:[#allocation20_spill]] }
 0x2e3   : > { %s902_s20 = sand.u32 1, %s2021_s3  }
 0x2e4   : > { %p2023_p7 = scmp.ne.s32.totalorder %s2022_s8, 0  ;;  %s903_s21 = scalar_lea.sflag [#allocation4], %s902_s20 }
 0x2e6   : > { %p1154_p2 = pnand %p1162_p1, %p2023_p7 }
 0x2e8   : > { %p1155_p3 = pneg %p1154_p2 }
 0x2ea   : > { %1460 = dma.done.wait (%p1155_p3), %s903_s21, 256  }
 0x2eb   : > { %1462 = vsyncadd (%p1155_p3), %s903_s21, 4294967040  ;;  %s28_s15 = sadd.s32 1, %s1505_s15   ;;  %s2024_s26 = sld [smem:[#allocation21_spill]] }
 0x2ec   : > { %p25_p5 = scmp.ge.s32.totalorder %s28_s15, 6   ;;  %s2025_s27 = smov %s1469_s28 }
 0x2ed   : > { %s2026_s28 = smov %s1473_s29  ;;  %s2027_s29 = smov %s1748_s25 }
 0x2ee   : > { %s2028_s30 = smov %s1481_s9  ;;  %s2029_s9 = smov %s1485_s10 }
 0x2ef   : > { %s2030_s10 = smov %s1709_s11  ;;  %s2031_s11 = smov %s1497_s13 }
 0x2f0   : > { %s2032_s12 = smov %s1501_s14  ;;  %s2034_s14 = smov %s2040_s2 }
 0x2f1   : > { %s2033_s13 = smov %s2024_s26  ;;  %27 = sbr.rel (!%p25_p5) target bundleno = 20 (0x14), region = 118 }
 0x2f6   :  { %908 = vsyncpa [#allocation3], 1 }
 0x2f7   :  { %910 = vsyncpa [#allocation3 + $0x1], 1 }
 0x2f8   :  { %911 = vsyncpa [#allocation6], 1 }
 0x2f9   :  { %913 = vsyncpa [#allocation6 + $0x1], 1 }
 0x2fa   :  { %914 = vsyncpa [#allocation9], 1 }
 0x2fb   :  { %915 = vsyncpa [#allocation4], 1 }
 0x2fc   :  { %917 = vsyncpa [#allocation4 + $0x1], 1 }

</bundles_post_ra>
